<compile_context>
chip_gen: v6e
topology: v6e:2x2x1
jax: 0.10.0
libtpu: 0.0.40
codegen_flags: <defaults>
</compile_context>

<pallas_src>
import jax
import jax.numpy as jnp
import numpy as np
from jax.experimental import pallas as pl
from jax.experimental.pallas import tpu as pltpu


def _round_up(n, m):
    return (n + m - 1) // m * m


def _mdn_kernel(x_ref, w1_ref, b1_ref, w2_ref, b2_ref, w3_ref, b3_ref, out_ref):
    """One batch tile: 3 MXU matmuls + 2 sigmoids + masked exp, fused output."""
    mxu_dtype = w1_ref.dtype            # bf16 or f32: what the MXU is fed
    x = x_ref[...]

    h1 = jax.nn.sigmoid(
        jnp.dot(x, w1_ref[...], preferred_element_type=jnp.float32)
        + b1_ref[...].astype(jnp.float32))
    h2 = jax.nn.sigmoid(
        jnp.dot(h1.astype(mxu_dtype), w2_ref[...],
                preferred_element_type=jnp.float32)
        + b2_ref[...].astype(jnp.float32))
    p = (jnp.dot(h2.astype(mxu_dtype), w3_ref[...],
                 preferred_element_type=jnp.float32)
         + b3_ref[...].astype(jnp.float32))

    # Fused lane-dense output: cols [0, D) = mean, cols [D, 2D) = exp(sd).
    D = out_ref.shape[1] // 2
    col = jax.lax.broadcasted_iota(jnp.int32, p.shape, dimension=1)
    out_ref[...] = jnp.where(col >= D, jnp.exp(p), p).astype(out_ref.dtype)


def mixture_diag_normal_forward(x, params, n_components, out_dim, *, tile_b=1024):
    """Returns (mean, scale), each of shape [batch, n_components, out_dim]."""
    w1, b1, w2, b2, w3, b3 = params
    B, in_dim = x.shape
    hidden_dim = w1.shape[1]
    D = out_dim * n_components
    D2 = 2 * D
    assert w3.shape[1] == D2, "last layer must produce 2 * out_dim * n_components"

    # Batch tiling: tile must be a multiple of 8 (sublane) unless it equals B.
    tile = min(tile_b, _round_up(B, 8))
    B_pad = _round_up(B, tile)
    if B_pad != B:
        x = jnp.pad(x, ((0, B_pad - B), (0, 0)))
    grid = (B_pad // tile,)

    pinned = lambda a: pl.BlockSpec(a.shape, lambda i: (0,) * a.ndim)

    itemsize = int(jnp.dtype(x.dtype).itemsize)
    weight_bytes = sum(int(np.prod(a.shape)) * int(jnp.dtype(a.dtype).itemsize)
                       for a in (w1, b1, w2, b2, w3, b3))
    cost = pl.CostEstimate(
        flops=2 * B_pad * (in_dim * hidden_dim + hidden_dim * hidden_dim
                           + hidden_dim * D2),
        transcendentals=B_pad * (2 * hidden_dim + D),
        bytes_accessed=B_pad * (in_dim + D2) * itemsize + weight_bytes,
    )

    out = pl.pallas_call(
        _mdn_kernel,
        out_shape=jax.ShapeDtypeStruct((B_pad, D2), x.dtype),
        grid=grid,
        in_specs=[
            pl.BlockSpec((tile, in_dim), lambda i: (i, 0)),   # x: streamed
            pinned(w1), pinned(b1),                           # weights: resident
            pinned(w2), pinned(b2),
            pinned(w3), pinned(b3),
        ],
        out_specs=pl.BlockSpec((tile, D2), lambda i: (i, 0)),
        compiler_params=pltpu.CompilerParams(
            dimension_semantics=("parallel",)),
        cost_estimate=cost,
    )(x, w1, b1, w2, b2, w3, b3)

    out = out[:B]
    # PyTorch's split(out_dim, dim=1) + stack + transpose(0,1) == reshape.
    mean = out[:, :D].reshape(B, n_components, out_dim)
    scale = out[:, D:].reshape(B, n_components, out_dim)
    return mean, scale


def init_params(key, in_dim, hidden_dim, n_components, out_dim, dtype=jnp.float32):
    """PyTorch-style Linear init (U[-1/sqrt(fan_in), 1/sqrt(fan_in)]),
    stored [fan_in, fan_out] so the kernel computes x @ W + b."""
    def linear(k, fan_in, fan_out):
        kw, kb = jax.random.split(k)
        bound = 1.0 / np.sqrt(fan_in)
        w = jax.random.uniform(kw, (fan_in, fan_out), jnp.float32, -bound, bound)
        b = jax.random.uniform(kb, (1, fan_out), jnp.float32, -bound, bound)
        return w.astype(dtype), b.astype(dtype)

    k1, k2, k3 = jax.random.split(key, 3)
    w1, b1 = linear(k1, in_dim, hidden_dim)
    w2, b2 = linear(k2, hidden_dim, hidden_dim)
    w3, b3 = linear(k3, hidden_dim, 2 * out_dim * n_components)
    return (w1, b1, w2, b2, w3, b3)


def _reference(x, params, n_components, out_dim):
    w1, b1, w2, b2, w3, b3 = [jnp.asarray(p, jnp.float32) for p in params]
    x = jnp.asarray(x, jnp.float32)
    h1 = jax.nn.sigmoid(x @ w1 + b1)
    h2 = jax.nn.sigmoid(h1 @ w2 + b2)
    p = h2 @ w3 + b3
    D = out_dim * n_components
    mean = p[:, :D].reshape(x.shape[0], n_components, out_dim)
    scale = jnp.exp(p[:, D:]).reshape(x.shape[0], n_components, out_dim)
    return mean, scale


if __name__ == "__main__":
    batch = 8
    in_dim = 32
    hidden_dim = 32          # PyTorch default: hidden_dim = in_dim
    n_components = 4
    out_dim = 8

    key = jax.random.PRNGKey(0)
    kx, kp = jax.random.split(key)
    x = jax.random.normal(kx, (batch, in_dim), jnp.float32)
    params = init_params(kp, in_dim, hidden_dim, n_components, out_dim)
    mean_ref, scale_ref = _reference(x, params, n_components, out_dim)

    fwd = jax.jit(
        lambda x, p: mixture_diag_normal_forward(x, p, n_components, out_dim))

    # f32 path — exact check against reference.
    mean, scale = fwd(x, params)
    jax.block_until_ready((mean, scale))
    np.testing.assert_allclose(np.asarray(mean), np.asarray(mean_ref),
                               rtol=1e-5, atol=1e-5)
    np.testing.assert_allclose(np.asarray(scale), np.asarray(scale_ref),
                               rtol=1e-5, atol=1e-5)
    assert mean.shape == (batch, n_components, out_dim)
    assert scale.shape == (batch, n_components, out_dim)

    # bf16 I/O path (HBM-traffic optimization) — loose check, f32 accumulation.
    x_bf16 = x.astype(jnp.bfloat16)
    params_bf16 = tuple(p.astype(jnp.bfloat16) for p in params)
    mean16, scale16 = fwd(x_bf16, params_bf16)
    jax.block_until_ready((mean16, scale16))
    np.testing.assert_allclose(np.asarray(mean16, dtype=np.float32),
                               np.asarray(mean_ref), rtol=1e-1, atol=1e-1)
    np.testing.assert_allclose(np.asarray(scale16, dtype=np.float32),
                               np.asarray(scale_ref), rtol=1e-1, atol=1e-1)

    print("KERNEL_OK")
</pallas_src>

<mosaic_0001>
module attributes {stable_mosaic.version = 11 : i64} {
  func.func @_mdn_kernel(%arg0: i32, %arg1: memref<8x32xf32, #tpu.memory_space<vmem>>, %arg2: memref<32x32xf32, #tpu.memory_space<vmem>>, %arg3: memref<1x32xf32, #tpu.memory_space<vmem>>, %arg4: memref<32x32xf32, #tpu.memory_space<vmem>>, %arg5: memref<1x32xf32, #tpu.memory_space<vmem>>, %arg6: memref<32x64xf32, #tpu.memory_space<vmem>>, %arg7: memref<1x64xf32, #tpu.memory_space<vmem>>, %arg8: memref<8x64xf32, #tpu.memory_space<vmem>>) attributes {dimension_semantics = [#tpu.dimension_semantics<parallel>], iteration_bounds = array<i64: 1>, scalar_prefetch = 0 : i64, scratch_operands = 0 : i64, tpu.core_type = #tpu.core_type<tc>, window_params = [{transform_indices = @transform_0, window_bounds = array<i64: 8, 32>}, {pipeline_mode = #tpu.pipeline_mode<synchronous>, transform_indices = @transform_1, window_bounds = array<i64: 32, 32>}, {pipeline_mode = #tpu.pipeline_mode<synchronous>, transform_indices = @transform_2, window_bounds = array<i64: 1, 32>}, {pipeline_mode = #tpu.pipeline_mode<synchronous>, transform_indices = @transform_3, window_bounds = array<i64: 32, 32>}, {pipeline_mode = #tpu.pipeline_mode<synchronous>, transform_indices = @transform_4, window_bounds = array<i64: 1, 32>}, {pipeline_mode = #tpu.pipeline_mode<synchronous>, transform_indices = @transform_5, window_bounds = array<i64: 32, 64>}, {pipeline_mode = #tpu.pipeline_mode<synchronous>, transform_indices = @transform_6, window_bounds = array<i64: 1, 64>}, {transform_indices = @transform_7, window_bounds = array<i64: 8, 64>}]} {
    %c0 = arith.constant 0 : index
    %c0_0 = arith.constant 0 : index
    %0 = vector.load %arg1[%c0, %c0_0] : memref<8x32xf32, #tpu.memory_space<vmem>>, vector<8x32xf32>
    %c0_1 = arith.constant 0 : index
    %c0_2 = arith.constant 0 : index
    %1 = vector.load %arg2[%c0_1, %c0_2] : memref<32x32xf32, #tpu.memory_space<vmem>>, vector<32x32xf32>
    %cst = arith.constant dense<0.000000e+00> : vector<8x32xf32>
    %2 = tpu.matmul %0, %1, %cst {dimension_numbers = #tpu.dot_dimension_numbers<[1], [0], [0], [1], [0, 0, 1, 1], [], []>} : vector<8x32xf32>, vector<32x32xf32>, vector<8x32xf32> -> vector<8x32xf32>
    %c0_3 = arith.constant 0 : index
    %c0_4 = arith.constant 0 : index
    %3 = vector.load %arg3[%c0_3, %c0_4] : memref<1x32xf32, #tpu.memory_space<vmem>>, vector<1x32xf32>
    %4 = vector.broadcast %3 : vector<1x32xf32> to vector<8x32xf32>
    %5 = arith.addf %2, %4 : vector<8x32xf32>
    %6 = arith.negf %5 : vector<8x32xf32>
    %7 = math.exp %6 : vector<8x32xf32>
    %cst_5 = arith.constant 1.000000e+00 : f32
    %8 = vector.broadcast %cst_5 : f32 to vector<8x32xf32>
    %9 = arith.addf %8, %7 : vector<8x32xf32>
    %10 = arith.divf %8, %9 : vector<8x32xf32>
    %c0_6 = arith.constant 0 : index
    %c0_7 = arith.constant 0 : index
    %11 = vector.load %arg4[%c0_6, %c0_7] : memref<32x32xf32, #tpu.memory_space<vmem>>, vector<32x32xf32>
    %cst_8 = arith.constant dense<0.000000e+00> : vector<8x32xf32>
    %12 = tpu.matmul %10, %11, %cst_8 {dimension_numbers = #tpu.dot_dimension_numbers<[1], [0], [0], [1], [0, 0, 1, 1], [], []>} : vector<8x32xf32>, vector<32x32xf32>, vector<8x32xf32> -> vector<8x32xf32>
    %c0_9 = arith.constant 0 : index
    %c0_10 = arith.constant 0 : index
    %13 = vector.load %arg5[%c0_9, %c0_10] : memref<1x32xf32, #tpu.memory_space<vmem>>, vector<1x32xf32>
    %14 = vector.broadcast %13 : vector<1x32xf32> to vector<8x32xf32>
    %15 = arith.addf %12, %14 : vector<8x32xf32>
    %16 = arith.negf %15 : vector<8x32xf32>
    %17 = math.exp %16 : vector<8x32xf32>
    %cst_11 = arith.constant 1.000000e+00 : f32
    %18 = vector.broadcast %cst_11 : f32 to vector<8x32xf32>
    %19 = arith.addf %18, %17 : vector<8x32xf32>
    %20 = arith.divf %18, %19 : vector<8x32xf32>
    %c0_12 = arith.constant 0 : index
    %c0_13 = arith.constant 0 : index
    %21 = vector.load %arg6[%c0_12, %c0_13] : memref<32x64xf32, #tpu.memory_space<vmem>>, vector<32x64xf32>
    %cst_14 = arith.constant dense<0.000000e+00> : vector<8x64xf32>
    %22 = tpu.matmul %20, %21, %cst_14 {dimension_numbers = #tpu.dot_dimension_numbers<[1], [0], [0], [1], [0, 0, 1, 1], [], []>} : vector<8x32xf32>, vector<32x64xf32>, vector<8x64xf32> -> vector<8x64xf32>
    %c0_15 = arith.constant 0 : index
    %c0_16 = arith.constant 0 : index
    %23 = vector.load %arg7[%c0_15, %c0_16] : memref<1x64xf32, #tpu.memory_space<vmem>>, vector<1x64xf32>
    %24 = vector.broadcast %23 : vector<1x64xf32> to vector<8x64xf32>
    %25 = arith.addf %22, %24 : vector<8x64xf32>
    %26 = tpu.iota {dimensions = array<i32: 1>} : vector<8x64xi32>
    %c32_i32 = arith.constant 32 : i32
    %27 = vector.broadcast %c32_i32 : i32 to vector<8x64xi32>
    %28 = arith.cmpi sge, %26, %27 : vector<8x64xi32>
    %29 = math.exp %25 : vector<8x64xf32>
    %30 = arith.select %28, %29, %25 : vector<8x64xi1>, vector<8x64xf32>
    %c0_17 = arith.constant 0 : index
    %c0_18 = arith.constant 0 : index
    %31 = vector.load %arg8[%c0_17, %c0_18] : memref<8x64xf32, #tpu.memory_space<vmem>>, vector<8x64xf32>
    tpu.vector_store %arg8[%c0_17, %c0_18], %30 {strides = array<i32>} : memref<8x64xf32, #tpu.memory_space<vmem>>, vector<8x64xf32>,
    return
  }
  func.func @transform_0(%arg0: i32) -> (i32, i32) {
    %c0_i32 = arith.constant 0 : i32
    %c0_i32_0 = arith.constant 0 : i32
    return %arg0, %c0_i32 : i32, i32
  }
  func.func @transform_1(%arg0: i32) -> (i32, i32) {
    %c0_i32 = arith.constant 0 : i32
    %c0_i32_0 = arith.constant 0 : i32
    %c0_i32_1 = arith.constant 0 : i32
    return %c0_i32, %c0_i32_0 : i32, i32
  }
  func.func @transform_2(%arg0: i32) -> (i32, i32) {
    %c0_i32 = arith.constant 0 : i32
    %c0_i32_0 = arith.constant 0 : i32
    %c0_i32_1 = arith.constant 0 : i32
    return %c0_i32, %c0_i32_0 : i32, i32
  }
  func.func @transform_3(%arg0: i32) -> (i32, i32) {
    %c0_i32 = arith.constant 0 : i32
    %c0_i32_0 = arith.constant 0 : i32
    %c0_i32_1 = arith.constant 0 : i32
    return %c0_i32, %c0_i32_0 : i32, i32
  }
  func.func @transform_4(%arg0: i32) -> (i32, i32) {
    %c0_i32 = arith.constant 0 : i32
    %c0_i32_0 = arith.constant 0 : i32
    %c0_i32_1 = arith.constant 0 : i32
    return %c0_i32, %c0_i32_0 : i32, i32
  }
  func.func @transform_5(%arg0: i32) -> (i32, i32) {
    %c0_i32 = arith.constant 0 : i32
    %c0_i32_0 = arith.constant 0 : i32
    %c0_i32_1 = arith.constant 0 : i32
    return %c0_i32, %c0_i32_0 : i32, i32
  }
  func.func @transform_6(%arg0: i32) -> (i32, i32) {
    %c0_i32 = arith.constant 0 : i32
    %c0_i32_0 = arith.constant 0 : i32
    %c0_i32_1 = arith.constant 0 : i32
    return %c0_i32, %c0_i32_0 : i32, i32
  }
  func.func @transform_7(%arg0: i32) -> (i32, i32) {
    %c0_i32 = arith.constant 0 : i32
    %c0_i32_0 = arith.constant 0 : i32
    return %arg0, %c0_i32 : i32, i32
  }
}

</mosaic_0001>

<bundles_post_ra>
// kernel: _lambda_.1
= control target key start
LH: loop header
LB: loop body
LE: loop exit
PB: predicated region body
PF: predicated region fallthrough
CT: control target
= control target key end

     0   :  { %12 = vsyncpa [#allocation3], 0  ;;  %s607_s0 = inlined_call_operand.hbm [shape: f32[8,32], index: 0, kind: input, shape index: {}]   ;;  %s608_s1 = inlined_call_operand.hbm [shape: f32[32,32], index: 1, kind: input, shape index: {}]   ;;  %s609_s2 = inlined_call_operand.vmem [shape: f32[1,32], index: 2, kind: input, shape index: {}]   ;;  %s610_s3 = inlined_call_operand.hbm [shape: f32[32,32], index: 3, kind: input, shape index: {}]   ;;  %s611_s4 = inlined_call_operand.vmem [shape: f32[1,32], index: 4, kind: input, shape index: {}]   ;;  %s612_s5 = inlined_call_operand.hbm [shape: f32[32,64], index: 5, kind: input, shape index: {}]   ;;  %s613_s6 = inlined_call_operand.vmem [shape: f32[1,64], index: 6, kind: input, shape index: {}]   ;;  %s614_s7 = inlined_call_operand.vmem [shape: f32[8,64], index: 7, kind: output, shape index: {}]  }
   0x1   :  { %13 = vsyncpa [#allocation5], 0 }
   0x2   :  { %14 = vsyncpa [#allocation8], 0  ;;  %s520_s24 = smov [#allocation4]  }
   0x3   :  { %s30_s25 = sshll.u32 %s520_s24, 4  ;;  %s31_s25 = int_to_ptr.vmem [resolvable:$true] %s30_s25 }
   0x4   :  { %s442_s26 = scalar_lea.vmem %s31_s25, 512  ;;  %p447_p1 = scmp.lt.s32.totalorder %s31_s25, %s31_s25 }
   0x5   :  { %p443_p0 = scmp.ne.s32.totalorder %s31_s25, %s442_s26  ;;  %p448_p2 = scmp.lt.s32.totalorder %s442_s26, %s442_s26 }
   0x7   :  { %p449_p3 = por %p448_p2, %p447_p1 }
   0x9   :  { %p450_p4 = pnand %p449_p3, %p443_p0 }
   0xb   :  { %453 = shalt.err (!%p450_p4)
}
   0xc   :  { %s521_s27 = smov 128   ;;  %s522_s28 = smov 8  }
   0xd   :  { %36 = dma.hbm_to_vmem [thread:$0]  %s608_s1, 512, %s31_s25, [#allocation5], %s521_s27, %s521_s27, %s522_s28  }
   0xe   :  { %s523_s8 = smov [#allocation2]   ;;  %s524_s10 = smov [#allocation6]  }
   0xf   :  { %s21_s9 = sshll.u32 %s523_s8, 4  ;;  %s44_s11 = sshll.u32 %s524_s10, 4  ;;  %s22_s9 = int_to_ptr.vmem [resolvable:$true] %s21_s9  ;;  %s45_s11 = int_to_ptr.vmem [resolvable:$true] %s44_s11 }
  0x10   :  { %s462_s12 = scalar_lea.vmem %s22_s9, 128  ;;  %p467_p6 = scmp.lt.s32.totalorder %s22_s9, %s22_s9 }
  0x11   :  { %p463_p5 = scmp.ne.s32.totalorder %s22_s9, %s462_s12  ;;  %p468_p7 = scmp.lt.s32.totalorder %s462_s12, %s462_s12 }
  0x13   :  { %p469_p8 = por %p468_p7, %p467_p6 }
  0x15   :  { %p470_p9 = pnand %p469_p8, %p463_p5 }
  0x17   :  { %473 = shalt.err (!%p470_p9)
}
  0x18   :  { %24 = dma.hbm_to_vmem [thread:$0]  %s607_s0, 128, %s22_s9, [#allocation3]  }
  0x19   :  { %s482_s15 = scalar_lea.vmem %s45_s11, 512  ;;  %p487_p11 = scmp.lt.s32.totalorder %s45_s11, %s45_s11 }
  0x1a   :  { %p483_p10 = scmp.ne.s32.totalorder %s45_s11, %s482_s15  ;;  %p488_p12 = scmp.lt.s32.totalorder %s482_s15, %s482_s15 }
  0x1c   :  { %p489_p13 = por %p488_p12, %p487_p11 }
  0x1e   :  { %p490_p0 = pnand %p489_p13, %p483_p10 }
  0x20   :  { %493 = shalt.err (!%p490_p0)
}
  0x21   :  { %50 = dma.hbm_to_vmem [thread:$0]  %s610_s3, 512, %s45_s11, [#allocation5], %s521_s27, %s521_s27, %s522_s28  }
  0x22   :  { %s525_s17 = smov [#allocation7]  }
  0x23   :  { %s58_s18 = sshll.u32 %s525_s17, 4  ;;  %s59_s18 = int_to_ptr.vmem [resolvable:$true] %s58_s18 }
  0x24   :  { %s502_s19 = scalar_lea.vmem %s59_s18, 512  ;;  %p507_p2 = scmp.lt.s32.totalorder %s59_s18, %s59_s18 }
  0x25   :  { %p503_p1 = scmp.ne.s32.totalorder %s59_s18, %s502_s19  ;;  %p508_p3 = scmp.lt.s32.totalorder %s502_s19, %s502_s19 }
  0x27   :  { %p509_p4 = por %p508_p3, %p507_p2 }
  0x29   :  { %p510_p5 = pnand %p509_p4, %p503_p1 }
  0x2b   :  { %513 = shalt.err (!%p510_p5)
}
  0x2c   :  { %64 = dma.hbm_to_vmem [thread:$0]  %s612_s5, 512, %s59_s18, [#allocation8], %s521_s27, %s521_s27, %s522_s28  }
  0x2d   :  { %514 = dma.done.wait [#allocation3], 128  }
  0x2e   :  { %515 = vsyncadd [#allocation3], 4294967168 }
  0x2f   :  { %516 = dma.done.wait [#allocation5], 1024  }
  0x30   :  { %517 = vsyncadd [#allocation5], 4294966272 }
  0x31   :  { %518 = dma.done.wait [#allocation8], 512  }
  0x32   :  { %519 = vsyncadd [#allocation8], 4294966784  ;;  %v526_v0 = vmov 0.0   ;;  %vm527_vm0 = vmmov 0   ;;  %v83_v1 = vld [vmem:[#allocation4 + $0x18] sm:$0xff]  ;;  %v82_v2 = vld [vmem:[#allocation4 + $0x10] sm:$0xff]  ;;  %v345_v35 = vlaneseq }
  0x33   :  { %383 = vmatprep.subr.mxu0 %v526_v0  ;;  %391 = vmatprep.mubr.msk.f32.mxu0 %vm527_vm0, %v526_v0  ;;  %v81_v3 = vld [vmem:[#allocation4 + $0x8] sm:$0xff]  ;;  %v80_v4 = vld [vmem:[#allocation4] sm:$0xff]  ;;  %v79_v5 = vld [vmem:[#allocation2] sm:$0xff]  ;;  %vm91_vm1 = vcmask 261120   ;;  %vm351_vm3 = vcmask 523264  }
  0x34   :  { %394 = vmatprep.subr.mxu1 %v526_v0  ;;  %402 = vmatprep.mubr.msk.f32.mxu1 %vm527_vm0, %v526_v0  ;;  %v174_v6 = vld [vmem:[#allocation6 + $0x18] sm:$0xff]  ;;  %v173_v7 = vld [vmem:[#allocation6 + $0x10] sm:$0xff]  ;;  %v172_v8 = vld [vmem:[#allocation6 + $0x8] sm:$0xff]  ;;  %v346_v36 = vand.u32 127, %v345_v35 }
  0x35   :  { %384 = vmatpush3.msra.mxu0 %v83_v1  ;;  %395 = vmatpush3.msra.mxu1 %v174_v6  ;;  %v171_v9 = vld [vmem:[#allocation6] sm:$0xff]  ;;  %v360_v10 = vld [vmem:[%s609_s2] ss:$0 sm:$0xff]  ;;  %v263_v19 = vld [vmem:[#allocation7 + $0x10] sm:$0xff] }
  0x36   :  { %385 = vmatprep.subr.mxu0 %v526_v0  ;;  %396 = vmatprep.subr.mxu1 %v526_v0  ;;  %v264_v18 = vld [vmem:[#allocation7 + $0x18] sm:$0xff]  ;;  %v262_v20 = vld [vmem:[#allocation7 + $0x8] sm:$0xff]  ;;  %v261_v21 = vld [vmem:[#allocation7] sm:$0xff]  ;;  %vm347_vm2 = vcmp.ge.s32.totalorder %v346_v36, 32 }
  0x37   :  { %386 = vmatpush3.msra.mxu0 %v82_v2  ;;  %397 = vmatpush3.msra.mxu1 %v173_v7  ;;  %v363_v22 = vld [vmem:[%s611_s4] ss:$0 sm:$0xff] }
  0x38   :  { %387 = vmatprep.subr.mxu0 %v526_v0  ;;  %398 = vmatprep.subr.mxu1 %v526_v0  ;;  %v366_v30 = vld [vmem:[%s613_s6] ss:$0 sm:$0xff] }
  0x39   :  { %388 = vmatpush3.msra.mxu0 %v81_v3  ;;  %399 = vmatpush3.msra.mxu1 %v172_v8 }
  0x3a   :  { %389 = vmatprep.subr.mxu0 %v526_v0  ;;  %400 = vmatprep.subr.mxu1 %v526_v0 }
  0x3b   :  { %390 = vmatpush3.msra.mxu0 %v80_v4  ;;  %401 = vmatpush3.msra.mxu1 %v171_v9 }
  0x3c   :  { %392 = vmatmul.mubr.msk.f32.vlgmr.msra.gmra.mxu0 %vm91_vm1, %v79_v5  ;;  %405 = vmatprep.subr.mxu0 %v526_v0 }
  0x3d   :  { %413 = vmatprep.mubr.msk.f32.mxu0 %vm527_vm0, %v526_v0  ;;  %406 = vmatpush3.msra.mxu0 %v264_v18 }
  0x3e   :  { %407 = vmatprep.subr.mxu0 %v526_v0 }
  0x3f   :  { %408 = vmatpush3.msra.mxu0 %v263_v19 }
  0x40   :  { %409 = vmatprep.subr.mxu0 %v526_v0 }
  0x41   :  { %410 = vmatpush3.msra.mxu0 %v262_v20 }
  0x42   :  { %411 = vmatprep.subr.mxu0 %v526_v0 }
  0x43   :  { %412 = vmatpush3.msra.mxu0 %v261_v21 }
  0xfc   :  { %v161_v11 = vpop.f32.mrf.mxu0 }
  0xfd   :  { %v162_v12 = vadd.f32 %v360_v10, %v161_v11 }
  0xfe   :  { %v393_v13 = vpop.f32.mrf.mxu0 }
  0xff   :  { %v362_v14 = vmul.f32 -1.442695, %v162_v12 }
 0x101   :  { %424 = vpow2.f32 %v362_v14 }
 0x10e   :  { %v425_v15 = vpop.eup %424 }
 0x10f   :  { %v168_v16 = vadd.f32 1.0, %v425_v15 }
 0x111   :  { %426 = vrcp.f32 %v168_v16 }
 0x11e   :  { %v427_v17 = vpop.eup %426 }
 0x11f   :  { %403 = vmatmul.mubr.msk.f32.vlgmr.msra.gmra.mxu1 %vm91_vm1, %v427_v17 }
 0x1df   :  { %v251_v23 = vpop.f32.mrf.mxu1 }
 0x1e0   :  { %v252_v24 = vadd.f32 %v363_v22, %v251_v23 }
 0x1e1   :  { %v404_v25 = vpop.f32.mrf.mxu1 }
 0x1e2   :  { %v365_v26 = vmul.f32 -1.442695, %v252_v24 }
 0x1e4   :  { %428 = vpow2.f32 %v365_v26 }
 0x1f1   :  { %v429_v27 = vpop.eup %428 }
 0x1f2   :  { %v258_v28 = vadd.f32 1.0, %v429_v27 }
 0x1f4   :  { %430 = vrcp.f32 %v258_v28 }
 0x201   :  { %v431_v29 = vpop.eup %430 }
 0x202   :  { %414 = vmatmul.mubr.msk.f32.vlgmr.msra.gmra.mxu0 %vm91_vm1, %v431_v29 }
 0x2c2   :  { %v341_v31 = vpop.f32.mrf.mxu0 }
 0x2c3   :  { %v342_v32 = vadd.f32 %v366_v30, %v341_v31 }
 0x2c4   :  { %v415_v33 = vpop.f32.mrf.mxu0 }
 0x2c5   :  { %v348_v34 = vmul.f32 1.442695, %v342_v32 }
 0x2c7   :  { %432 = vpow2.f32 %v348_v34 }
 0x2d4   :  { %v433_v37 = vpop.eup %432 }
 0x2d5   :  { %v350_v38 = vsel %vm347_vm2, %v433_v37, %v342_v32 }
 0x2d6   :  { %352 = vst.msk [vmem:[%s614_s7] sm:$0xff] %vm351_vm3, %v350_v38 }
 0x2d7   :  { %357 = vsyncpa [#allocation3], 1 }
 0x2d8   :  { %358 = vsyncpa [#allocation5], 1 }
 0x2d9   :  { %359 = vsyncpa [#allocation8], 1 }

</bundles_post_ra>
